<compile_context>
chip_gen: v7x
topology: tpu7x:2x2x1
jax: 0.10.0
libtpu: 0.0.40
codegen_flags: <defaults>
</compile_context>

<pallas_src>
import math
import jax
import jax.numpy as jnp
from jax.experimental import pallas as pl
from jax.experimental.pallas import tpu as pltpu

_LANE = 128
_VMEM_LIMIT = 48 * 1024 * 1024  # conservative: fits v7x's 64 MiB/TC physical VMEM


def _round_up(x, m):
    return (x + m - 1) // m * m


def _tile_m(M):
    """Pick the M tile and padded M (multiple of the tile)."""
    TM = 512 if M >= 512 else _round_up(M, 8)
    return TM, _round_up(M, TM)


# ---------------------------------------------------------------------------
# Pallas kernels
# ---------------------------------------------------------------------------
def _matmul_stats_kernel(p_ref, w_ref, y_ref, sum_ref, sq_ref):
    """bf16 MXU matmul (f32 accum) + per-channel sum / sum-of-squares accumulation."""
    y = jnp.dot(p_ref[...], w_ref[...], preferred_element_type=jnp.float32)
    y_ref[...] = y

    @pl.when(pl.program_id(0) == 0)
    def _():
        sum_ref[...] = jnp.zeros_like(sum_ref)
        sq_ref[...] = jnp.zeros_like(sq_ref)

    sum_ref[...] += jnp.sum(y, axis=0, keepdims=True)
    sq_ref[...] += jnp.sum(y * y, axis=0, keepdims=True)


def _make_bn_apply_kernel(eps, has_residual, apply_relu, inv_m):
    def kernel(*refs):
        if has_residual:
            y_ref, sum_ref, sq_ref, g_ref, b_ref, r_ref, o_ref = refs
        else:
            y_ref, sum_ref, sq_ref, g_ref, b_ref, o_ref = refs

        mean = sum_ref[...] * inv_m                                   # (1, C)
        var = jnp.maximum(sq_ref[...] * inv_m - mean * mean, 0.0)     # (1, C)
        # NOTE: matches the reference exactly: divide by (sqrt(var) + eps),
        # not the usual sqrt(var + eps).
        inv = pl.reciprocal(jnp.sqrt(var) + eps, approx=True)
        scale = g_ref[...] * inv
        shift = b_ref[...] - mean * scale

        z = y_ref[...] * scale + shift                                # one FMA/elem
        if has_residual:
            z = z + r_ref[...]
        if apply_relu:
            z = jnp.maximum(z, 0.0)
        o_ref[...] = z

    return kernel


# ---------------------------------------------------------------------------
# Fused conv(as matmul) + BatchNorm(train) + optional residual + optional ReLU
# ---------------------------------------------------------------------------
def conv_bn_pallas(patches, packed_conv, *, eps=1e-5, residual_padded=None, relu=True):
    """patches: (M, K) f32 (unpadded). packed_conv: {'w': (K_pad,C_pad) bf16,
    'g','b': (1,C_pad) f32}. residual_padded: (M_pad, C_pad) f32 or None.
    Returns padded output (M_pad, C_pad) f32 (caller slices to (M, Cout))."""
    M, K = patches.shape
    K_pad, C_pad = packed_conv["w"].shape
    TM, M_pad = _tile_m(M)
    ntiles = M_pad // TM

    # Zero-pad rows/cols (zero rows contribute nothing to BN stats), cast to bf16.
    p = jnp.pad(patches, ((0, M_pad - M), (0, K_pad - K))).astype(jnp.bfloat16)

    # ---- pass 1: matmul + stats ------------------------------------------------
    flops1 = 2 * M_pad * K_pad * C_pad
    bytes1 = p.size * 2 + K_pad * C_pad * 2 + M_pad * C_pad * 4 + 2 * C_pad * 4
    y, s_sum, s_sq = pl.pallas_call(
        _matmul_stats_kernel,
        grid=(ntiles,),
        in_specs=[
            pl.BlockSpec((TM, K_pad), lambda i: (i, 0)),
            pl.BlockSpec((K_pad, C_pad), lambda i: (0, 0)),
        ],
        out_specs=[
            pl.BlockSpec((TM, C_pad), lambda i: (i, 0)),
            pl.BlockSpec((1, C_pad), lambda i: (0, 0)),   # resident accumulator
            pl.BlockSpec((1, C_pad), lambda i: (0, 0)),   # resident accumulator
        ],
        out_shape=[
            jax.ShapeDtypeStruct((M_pad, C_pad), jnp.float32),
            jax.ShapeDtypeStruct((1, C_pad), jnp.float32),
            jax.ShapeDtypeStruct((1, C_pad), jnp.float32),
        ],
        compiler_params=pltpu.CompilerParams(
            dimension_semantics=("arbitrary",),
            vmem_limit_bytes=_VMEM_LIMIT,
        ),
        cost_estimate=pl.CostEstimate(
            flops=flops1, transcendentals=0, bytes_accessed=bytes1),
    )(p, packed_conv["w"])

    # ---- pass 2: fold BN into scale/shift, +residual, ReLU ----------------------
    has_res = residual_padded is not None
    if has_res:
        assert residual_padded.shape == (M_pad, C_pad), (
            residual_padded.shape, (M_pad, C_pad))

    kernel2 = _make_bn_apply_kernel(eps, has_res, relu, 1.0 / float(M))
    args = [y, s_sum, s_sq, packed_conv["g"], packed_conv["b"]]
    in_specs = [
        pl.BlockSpec((TM, C_pad), lambda i: (i, 0)),
        pl.BlockSpec((1, C_pad), lambda i: (0, 0)),
        pl.BlockSpec((1, C_pad), lambda i: (0, 0)),
        pl.BlockSpec((1, C_pad), lambda i: (0, 0)),
        pl.BlockSpec((1, C_pad), lambda i: (0, 0)),
    ]
    if has_res:
        args.append(residual_padded)
        in_specs.append(pl.BlockSpec((TM, C_pad), lambda i: (i, 0)))

    bytes2 = (2 + int(has_res)) * M_pad * C_pad * 4 + 4 * C_pad * 4
    out = pl.pallas_call(
        kernel2,
        grid=(ntiles,),
        in_specs=in_specs,
        out_specs=pl.BlockSpec((TM, C_pad), lambda i: (i, 0)),
        out_shape=jax.ShapeDtypeStruct((M_pad, C_pad), jnp.float32),
        compiler_params=pltpu.CompilerParams(
            dimension_semantics=("parallel",),
            vmem_limit_bytes=_VMEM_LIMIT,
        ),
        cost_estimate=pl.CostEstimate(
            flops=(4 + int(has_res)) * M_pad * C_pad,
            transcendentals=C_pad,
            bytes_accessed=bytes2),
    )(*args)
    return out


# ---------------------------------------------------------------------------
# Glue: NHWC im2col (XLA), parameter init & one-time packing
# ---------------------------------------------------------------------------
def im2col_nhwc(x, kh, kw, stride, pad):
    """x: (B, H, W, C) -> patches (B*OH*OW, C*kh*kw); K ordered (C, kh, kw)."""
    if pad:
        x = jnp.pad(x, ((0, 0), (pad, pad), (pad, pad), (0, 0)))
    B, H, W, C = x.shape
    oh = (H - kh) // stride + 1
    ow = (W - kw) // stride + 1
    taps = []
    for r in range(kh):
        for c in range(kw):
            taps.append(x[:, r:r + stride * oh:stride, c:c + stride * ow:stride, :])
    p = jnp.stack(taps, axis=-1)                       # (B, oh, ow, C, kh*kw)
    return p.reshape(B * oh * ow, C * kh * kw), (oh, ow)


def pack_conv_bn(w, gamma, beta):
    """(O, Cin, kh, kw) -> lane-padded bf16 (K_pad, C_pad) matrix + padded g/b."""
    O, Cin, kh, kw = w.shape
    K = Cin * kh * kw
    K_pad = _round_up(K, _LANE)
    C_pad = _round_up(O, _LANE)
    w_mat = jnp.transpose(w.reshape(O, K))             # (K, O), K-order (Cin, kh, kw)
    w_mat = jnp.pad(w_mat, ((0, K_pad - K), (0, C_pad - O))).astype(jnp.bfloat16)
    g = jnp.pad(gamma, (0, C_pad - O)).reshape(1, C_pad).astype(jnp.float32)
    b = jnp.pad(beta, (0, C_pad - O)).reshape(1, C_pad).astype(jnp.float32)
    return {"w": w_mat, "g": g, "b": b}


def init_conv_weight(key, in_ch, out_ch, kh, kw):
    fan_in = in_ch * kh * kw
    limit = 1.0 / math.sqrt(fan_in)
    return jax.random.uniform(key, (out_ch, in_ch, kh, kw), jnp.float32, -limit, limit)


def init_residual_block(key, in_feats, out_feats, first_stride):
    k1, k2, k3 = jax.random.split(key, 3)
    params = {
        "w1": init_conv_weight(k1, in_feats, out_feats, 3, 3),
        "g1": jnp.ones((out_feats,), jnp.float32),
        "b1": jnp.zeros((out_feats,), jnp.float32),
        "w2": init_conv_weight(k2, out_feats, out_feats, 3, 3),
        "g2": jnp.ones((out_feats,), jnp.float32),
        "b2": jnp.zeros((out_feats,), jnp.float32),
        "first_stride": first_stride,
    }
    if first_stride != 1:
        params["wr"] = init_conv_weight(k3, in_feats, out_feats, 1, 1)
        params["gr"] = jnp.ones((out_feats,), jnp.float32)
        params["br"] = jnp.zeros((out_feats,), jnp.float32)
    return params


def init_block_group(key, n_blocks, in_feats, out_feats, first_stride):
    keys = jax.random.split(key, n_blocks)
    blocks = [init_residual_block(keys[0], in_feats, out_feats, first_stride)]
    for i in range(1, n_blocks):
        blocks.append(init_residual_block(keys[i], out_feats, out_feats, 1))
    return blocks


def pack_block_group(blocks):
    """One-time packing of weights (hoisted out of the forward pass)."""
    packed = []
    for p in blocks:
        packed.append({
            "first_stride": p["first_stride"],
            "out_feats": int(p["w1"].shape[0]),
            "conv1": pack_conv_bn(p["w1"], p["g1"], p["b1"]),
            "conv2": pack_conv_bn(p["w2"], p["g2"], p["b2"]),
            "convr": (pack_conv_bn(p["wr"], p["gr"], p["br"])
                      if p["first_stride"] != 1 else None),
        })
    return packed


# ---------------------------------------------------------------------------
# Forward passes (Pallas kernels do the hot path; activations stay NHWC)
# ---------------------------------------------------------------------------
def residual_block_forward(packed, x_nhwc):
    s = packed["first_stride"]
    B, H, W, Cin = x_nhwc.shape
    Cout = packed["out_feats"]
    C_pad = packed["conv1"]["w"].shape[1]

    # left branch, conv1 (3x3, stride=s, pad=1) + BN + ReLU
    p1, (oh, ow) = im2col_nhwc(x_nhwc, 3, 3, s, 1)
    M = B * oh * ow
    TM, M_pad = _tile_m(M)
    y1_p = conv_bn_pallas(p1, packed["conv1"], relu=True)          # (M_pad, C_pad)
    y1 = y1_p[:M, :Cout].reshape(B, oh, ow, Cout)                  # NHWC, no transpose

    # right branch (residual), kept in padded (M_pad, C_pad) layout
    if packed["convr"] is not None:
        pr, _ = im2col_nhwc(x_nhwc, 1, 1, s, 0)
        res_p = conv_bn_pallas(pr, packed["convr"], relu=False)    # (M_pad, C_pad)
    else:
        res = x_nhwc.reshape(B * H * W, Cin)                       # identity (M == B*H*W)
        res_p = jnp.pad(res, ((0, M_pad - M), (0, C_pad - Cin)))

    # left branch, conv2 (3x3, stride=1, pad=1) + BN, + residual, ReLU (fused)
    p2, _ = im2col_nhwc(y1, 3, 3, 1, 1)
    out_p = conv_bn_pallas(p2, packed["conv2"], residual_padded=res_p, relu=True)
    return out_p[:M, :Cout].reshape(B, oh, ow, Cout)


def block_group_forward(packed_blocks, x_nchw):
    x = jnp.transpose(x_nchw, (0, 2, 3, 1))        # NCHW -> NHWC once
    for packed in packed_blocks:
        x = residual_block_forward(packed, x)
    return jnp.transpose(x, (0, 3, 1, 2))          # back to NCHW


# ---------------------------------------------------------------------------
# Pure-JAX reference (mirrors the PyTorch module, training-mode BN, f32)
# ---------------------------------------------------------------------------
def _conv2d_ref(x, w, stride, pad):
    return jax.lax.conv_general_dilated(
        x, w, window_strides=(stride, stride),
        padding=((pad, pad), (pad, pad)),
        dimension_numbers=("NCHW", "OIHW", "NCHW"))


def _bn_ref(x, gamma, beta, eps=1e-5):
    mean = jnp.mean(x, axis=(0, 2, 3), keepdims=True)
    var = jnp.mean((x - mean) ** 2, axis=(0, 2, 3), keepdims=True)
    return (x - mean) / (jnp.sqrt(var) + eps) * gamma[None, :, None, None] \
        + beta[None, :, None, None]


def _residual_block_ref(params, x):
    s = params["first_stride"]
    left = _conv2d_ref(x, params["w1"], s, 1)
    left = jnp.maximum(_bn_ref(left, params["g1"], params["b1"]), 0.0)
    left = _conv2d_ref(left, params["w2"], 1, 1)
    left = _bn_ref(left, params["g2"], params["b2"])
    if s != 1:
        right = _conv2d_ref(x, params["wr"], s, 0)
        right = _bn_ref(right, params["gr"], params["br"])
    else:
        right = x
    return jnp.maximum(left + right, 0.0)


def _block_group_ref(blocks, x):
    for params in blocks:
        x = _residual_block_ref(params, x)
    return x


# ---------------------------------------------------------------------------
if __name__ == "__main__":
    key = jax.random.PRNGKey(0)
    kx, kp = jax.random.split(key)

    # BlockGroup(n_blocks=2, in_feats=4, out_feats=8, first_stride=2)
    n_blocks, in_feats, out_feats, first_stride = 2, 4, 8, 2
    x = jax.random.normal(kx, (2, in_feats, 16, 16), jnp.float32)

    blocks = init_block_group(kp, n_blocks, in_feats, out_feats, first_stride)
    packed_blocks = pack_block_group(blocks)          # weights packed once

    fwd = jax.jit(lambda xx: block_group_forward(packed_blocks, xx))
    out = jax.block_until_ready(fwd(x))

    expected_shape = (2, out_feats, 16 // first_stride, 16 // first_stride)
    assert out.shape == expected_shape, (out.shape, expected_shape)
    assert bool(jnp.all(jnp.isfinite(out)))

    ref = jax.block_until_ready(_block_group_ref(blocks, x))
    max_err = float(jnp.max(jnp.abs(out - ref)))
    # bf16 MXU operands + approx reciprocal -> slightly looser tolerance than f32.
    assert jnp.allclose(out, ref, atol=3e-2, rtol=3e-2), max_err

    print("KERNEL_OK")
</pallas_src>

<mosaic_0001>
module attributes {stable_mosaic.version = 11 : i64} {
  func.func @kernel(%arg0: i32, %arg1: memref<128x128xf32, #tpu.memory_space<vmem>>, %arg2: memref<1x128xf32, #tpu.memory_space<vmem>>, %arg3: memref<1x128xf32, #tpu.memory_space<vmem>>, %arg4: memref<1x128xf32, #tpu.memory_space<vmem>>, %arg5: memref<1x128xf32, #tpu.memory_space<vmem>>, %arg6: memref<128x128xf32, #tpu.memory_space<vmem>>) attributes {dimension_semantics = [#tpu.dimension_semantics<parallel>], iteration_bounds = array<i64: 1>, scalar_prefetch = 0 : i64, scratch_operands = 0 : i64, tpu.core_type = #tpu.core_type<tc>, window_params = [{transform_indices = @transform_0, window_bounds = array<i64: 128, 128>}, {pipeline_mode = #tpu.pipeline_mode<synchronous>, transform_indices = @transform_1, window_bounds = array<i64: 1, 128>}, {pipeline_mode = #tpu.pipeline_mode<synchronous>, transform_indices = @transform_2, window_bounds = array<i64: 1, 128>}, {pipeline_mode = #tpu.pipeline_mode<synchronous>, transform_indices = @transform_3, window_bounds = array<i64: 1, 128>}, {pipeline_mode = #tpu.pipeline_mode<synchronous>, transform_indices = @transform_4, window_bounds = array<i64: 1, 128>}, {transform_indices = @transform_5, window_bounds = array<i64: 128, 128>}]} {
    %c0 = arith.constant 0 : index
    %c0_0 = arith.constant 0 : index
    %0 = vector.load %arg2[%c0, %c0_0] : memref<1x128xf32, #tpu.memory_space<vmem>>, vector<1x128xf32>
    %cst = arith.constant 7.812500e-03 : f32
    %1 = vector.broadcast %cst : f32 to vector<1x128xf32>
    %2 = arith.mulf %0, %1 : vector<1x128xf32>
    %c0_1 = arith.constant 0 : index
    %c0_2 = arith.constant 0 : index
    %3 = vector.load %arg3[%c0_1, %c0_2] : memref<1x128xf32, #tpu.memory_space<vmem>>, vector<1x128xf32>
    %cst_3 = arith.constant 7.812500e-03 : f32
    %4 = vector.broadcast %cst_3 : f32 to vector<1x128xf32>
    %5 = arith.mulf %3, %4 : vector<1x128xf32>
    %6 = arith.mulf %2, %2 : vector<1x128xf32>
    %7 = arith.subf %5, %6 : vector<1x128xf32>
    %cst_4 = arith.constant 0.000000e+00 : f32
    %8 = vector.broadcast %cst_4 : f32 to vector<1x128xf32>
    %9 = arith.maximumf %7, %8 : vector<1x128xf32>
    %10 = math.sqrt %9 : vector<1x128xf32>
    %cst_5 = arith.constant 9.99999974E-6 : f32
    %11 = vector.broadcast %cst_5 : f32 to vector<1x128xf32>
    %12 = arith.addf %10, %11 : vector<1x128xf32>
    %13 = tpu.reciprocal %12 {approx = true} : vector<1x128xf32> -> vector<1x128xf32>
    %c0_6 = arith.constant 0 : index
    %c0_7 = arith.constant 0 : index
    %14 = vector.load %arg4[%c0_6, %c0_7] : memref<1x128xf32, #tpu.memory_space<vmem>>, vector<1x128xf32>
    %15 = arith.mulf %14, %13 : vector<1x128xf32>
    %c0_8 = arith.constant 0 : index
    %c0_9 = arith.constant 0 : index
    %16 = vector.load %arg5[%c0_8, %c0_9] : memref<1x128xf32, #tpu.memory_space<vmem>>, vector<1x128xf32>
    %17 = arith.mulf %2, %15 : vector<1x128xf32>
    %18 = arith.subf %16, %17 : vector<1x128xf32>
    %c0_10 = arith.constant 0 : index
    %c0_11 = arith.constant 0 : index
    %19 = vector.load %arg1[%c0_10, %c0_11] : memref<128x128xf32, #tpu.memory_space<vmem>>, vector<128x128xf32>
    %20 = vector.broadcast %15 : vector<1x128xf32> to vector<128x128xf32>
    %21 = arith.mulf %19, %20 : vector<128x128xf32>
    %22 = vector.broadcast %18 : vector<1x128xf32> to vector<128x128xf32>
    %23 = arith.addf %21, %22 : vector<128x128xf32>
    %c0_12 = arith.constant 0 : index
    %c0_13 = arith.constant 0 : index
    %24 = vector.load %arg6[%c0_12, %c0_13] : memref<128x128xf32, #tpu.memory_space<vmem>>, vector<128x128xf32>
    tpu.vector_store %arg6[%c0_12, %c0_13], %23 {strides = array<i32>} : memref<128x128xf32, #tpu.memory_space<vmem>>, vector<128x128xf32>,
    return
  }
  func.func @transform_0(%arg0: i32) -> (i32, i32) {
    %c0_i32 = arith.constant 0 : i32
    %c0_i32_0 = arith.constant 0 : i32
    return %arg0, %c0_i32 : i32, i32
  }
  func.func @transform_1(%arg0: i32) -> (i32, i32) {
    %c0_i32 = arith.constant 0 : i32
    %c0_i32_0 = arith.constant 0 : i32
    %c0_i32_1 = arith.constant 0 : i32
    return %c0_i32, %c0_i32_0 : i32, i32
  }
  func.func @transform_2(%arg0: i32) -> (i32, i32) {
    %c0_i32 = arith.constant 0 : i32
    %c0_i32_0 = arith.constant 0 : i32
    %c0_i32_1 = arith.constant 0 : i32
    return %c0_i32, %c0_i32_0 : i32, i32
  }
  func.func @transform_3(%arg0: i32) -> (i32, i32) {
    %c0_i32 = arith.constant 0 : i32
    %c0_i32_0 = arith.constant 0 : i32
    %c0_i32_1 = arith.constant 0 : i32
    return %c0_i32, %c0_i32_0 : i32, i32
  }
  func.func @transform_4(%arg0: i32) -> (i32, i32) {
    %c0_i32 = arith.constant 0 : i32
    %c0_i32_0 = arith.constant 0 : i32
    %c0_i32_1 = arith.constant 0 : i32
    return %c0_i32, %c0_i32_0 : i32, i32
  }
  func.func @transform_5(%arg0: i32) -> (i32, i32) {
    %c0_i32 = arith.constant 0 : i32
    %c0_i32_0 = arith.constant 0 : i32
    return %arg0, %c0_i32 : i32, i32
  }
}

module attributes {stable_mosaic.version = 11 : i64} {
  func.func @_matmul_stats_kernel(%arg0: i32, %arg1: memref<128x128xbf16, #tpu.memory_space<vmem>>, %arg2: memref<128x128xbf16, #tpu.memory_space<vmem>>, %arg3: memref<128x128xf32, #tpu.memory_space<vmem>>, %arg4: memref<1x128xf32, #tpu.memory_space<vmem>>, %arg5: memref<1x128xf32, #tpu.memory_space<vmem>>) attributes {dimension_semantics = [#tpu.dimension_semantics<arbitrary>], iteration_bounds = array<i64: 1>, scalar_prefetch = 0 : i64, scratch_operands = 0 : i64, tpu.core_type = #tpu.core_type<tc>, window_params = [{transform_indices = @transform_0, window_bounds = array<i64: 128, 128>}, {pipeline_mode = #tpu.pipeline_mode<synchronous>, transform_indices = @transform_1, window_bounds = array<i64: 128, 128>}, {transform_indices = @transform_2, window_bounds = array<i64: 128, 128>}, {pipeline_mode = #tpu.pipeline_mode<synchronous>, transform_indices = @transform_3, window_bounds = array<i64: 1, 128>}, {pipeline_mode = #tpu.pipeline_mode<synchronous>, transform_indices = @transform_4, window_bounds = array<i64: 1, 128>}]} {
    %c0 = arith.constant 0 : index
    %c0_0 = arith.constant 0 : index
    %0 = vector.load %arg1[%c0, %c0_0] : memref<128x128xbf16, #tpu.memory_space<vmem>>, vector<128x128xbf16>
    %c0_1 = arith.constant 0 : index
    %c0_2 = arith.constant 0 : index
    %1 = vector.load %arg2[%c0_1, %c0_2] : memref<128x128xbf16, #tpu.memory_space<vmem>>, vector<128x128xbf16>
    %cst = arith.constant dense<0.000000e+00> : vector<128x128xf32>
    %2 = tpu.matmul %0, %1, %cst {dimension_numbers = #tpu.dot_dimension_numbers<[1], [0], [0], [1], [0, 0, 1, 1], [], []>} : vector<128x128xbf16>, vector<128x128xbf16>, vector<128x128xf32> -> vector<128x128xf32>
    %c0_3 = arith.constant 0 : index
    %c0_4 = arith.constant 0 : index
    %3 = vector.load %arg3[%c0_3, %c0_4] : memref<128x128xf32, #tpu.memory_space<vmem>>, vector<128x128xf32>
    tpu.vector_store %arg3[%c0_3, %c0_4], %2 {strides = array<i32>} : memref<128x128xf32, #tpu.memory_space<vmem>>, vector<128x128xf32>,
    %c0_i32 = arith.constant 0 : i32
    %4 = arith.cmpi eq, %arg0, %c0_i32 : i32
    %5 = arith.extui %4 : i1 to i32
    %c0_i32_5 = arith.constant 0 : i32
    %6 = arith.cmpi ne, %5, %c0_i32_5 : i32
    scf.if %6 {
      %cst_16 = arith.constant 0.000000e+00 : f32
      %18 = vector.broadcast %cst_16 : f32 to vector<1x128xf32>
      %c0_17 = arith.constant 0 : index
      %c0_18 = arith.constant 0 : index
      %19 = vector.load %arg4[%c0_17, %c0_18] : memref<1x128xf32, #tpu.memory_space<vmem>>, vector<1x128xf32>
      tpu.vector_store %arg4[%c0_17, %c0_18], %18 {strides = array<i32>} : memref<1x128xf32, #tpu.memory_space<vmem>>, vector<1x128xf32>,
      %cst_19 = arith.constant 0.000000e+00 : f32
      %20 = vector.broadcast %cst_19 : f32 to vector<1x128xf32>
      %c0_20 = arith.constant 0 : index
      %c0_21 = arith.constant 0 : index
      %21 = vector.load %arg5[%c0_20, %c0_21] : memref<1x128xf32, #tpu.memory_space<vmem>>, vector<1x128xf32>
      tpu.vector_store %arg5[%c0_20, %c0_21], %20 {strides = array<i32>} : memref<1x128xf32, #tpu.memory_space<vmem>>, vector<1x128xf32>,
    } else {
    }
    %c0_6 = arith.constant 0 : index
    %c0_7 = arith.constant 0 : index
    %7 = vector.load %arg4[%c0_6, %c0_7] : memref<1x128xf32, #tpu.memory_space<vmem>>, vector<1x128xf32>
    %cst_8 = arith.constant dense<0.000000e+00> : vector<128xf32>
    %8 = vector.multi_reduction <add>, %2, %cst_8 [0] : vector<128x128xf32> to vector<128xf32>
    %9 = vector.shape_cast %8 : vector<128xf32> to vector<1x128xf32>
    %10 = arith.addf %7, %9 : vector<1x128xf32>
    %c0_9 = arith.constant 0 : index
    %c0_10 = arith.constant 0 : index
    %11 = vector.load %arg4[%c0_9, %c0_10] : memref<1x128xf32, #tpu.memory_space<vmem>>, vector<1x128xf32>
    tpu.vector_store %arg4[%c0_9, %c0_10], %10 {strides = array<i32>} : memref<1x128xf32, #tpu.memory_space<vmem>>, vector<1x128xf32>,
    %c0_11 = arith.constant 0 : index
    %c0_12 = arith.constant 0 : index
    %12 = vector.load %arg5[%c0_11, %c0_12] : memref<1x128xf32, #tpu.memory_space<vmem>>, vector<1x128xf32>
    %13 = arith.mulf %2, %2 : vector<128x128xf32>
    %cst_13 = arith.constant dense<0.000000e+00> : vector<128xf32>
    %14 = vector.multi_reduction <add>, %13, %cst_13 [0] : vector<128x128xf32> to vector<128xf32>
    %15 = vector.shape_cast %14 : vector<128xf32> to vector<1x128xf32>
    %16 = arith.addf %12, %15 : vector<1x128xf32>
    %c0_14 = arith.constant 0 : index
    %c0_15 = arith.constant 0 : index
    %17 = vector.load %arg5[%c0_14, %c0_15] : memref<1x128xf32, #tpu.memory_space<vmem>>, vector<1x128xf32>
    tpu.vector_store %arg5[%c0_14, %c0_15], %16 {strides = array<i32>} : memref<1x128xf32, #tpu.memory_space<vmem>>, vector<1x128xf32>,
    return
  }
  func.func @transform_0(%arg0: i32) -> (i32, i32) {
    %c0_i32 = arith.constant 0 : i32
    %c0_i32_0 = arith.constant 0 : i32
    return %arg0, %c0_i32 : i32, i32
  }
  func.func @transform_1(%arg0: i32) -> (i32, i32) {
    %c0_i32 = arith.constant 0 : i32
    %c0_i32_0 = arith.constant 0 : i32
    %c0_i32_1 = arith.constant 0 : i32
    return %c0_i32, %c0_i32_0 : i32, i32
  }
  func.func @transform_2(%arg0: i32) -> (i32, i32) {
    %c0_i32 = arith.constant 0 : i32
    %c0_i32_0 = arith.constant 0 : i32
    return %arg0, %c0_i32 : i32, i32
  }
  func.func @transform_3(%arg0: i32) -> (i32, i32) {
    %c0_i32 = arith.constant 0 : i32
    %c0_i32_0 = arith.constant 0 : i32
    %c0_i32_1 = arith.constant 0 : i32
    return %c0_i32, %c0_i32_0 : i32, i32
  }
  func.func @transform_4(%arg0: i32) -> (i32, i32) {
    %c0_i32 = arith.constant 0 : i32
    %c0_i32_0 = arith.constant 0 : i32
    %c0_i32_1 = arith.constant 0 : i32
    return %c0_i32, %c0_i32_0 : i32, i32
  }
}

module attributes {stable_mosaic.version = 11 : i64} {
  func.func @kernel(%arg0: i32, %arg1: memref<128x128xf32, #tpu.memory_space<vmem>>, %arg2: memref<1x128xf32, #tpu.memory_space<vmem>>, %arg3: memref<1x128xf32, #tpu.memory_space<vmem>>, %arg4: memref<1x128xf32, #tpu.memory_space<vmem>>, %arg5: memref<1x128xf32, #tpu.memory_space<vmem>>, %arg6: memref<128x128xf32, #tpu.memory_space<vmem>>) attributes {dimension_semantics = [#tpu.dimension_semantics<parallel>], iteration_bounds = array<i64: 1>, scalar_prefetch = 0 : i64, scratch_operands = 0 : i64, tpu.core_type = #tpu.core_type<tc>, window_params = [{transform_indices = @transform_0, window_bounds = array<i64: 128, 128>}, {pipeline_mode = #tpu.pipeline_mode<synchronous>, transform_indices = @transform_1, window_bounds = array<i64: 1, 128>}, {pipeline_mode = #tpu.pipeline_mode<synchronous>, transform_indices = @transform_2, window_bounds = array<i64: 1, 128>}, {pipeline_mode = #tpu.pipeline_mode<synchronous>, transform_indices = @transform_3, window_bounds = array<i64: 1, 128>}, {pipeline_mode = #tpu.pipeline_mode<synchronous>, transform_indices = @transform_4, window_bounds = array<i64: 1, 128>}, {transform_indices = @transform_5, window_bounds = array<i64: 128, 128>}]} {
    %c0 = arith.constant 0 : index
    %c0_0 = arith.constant 0 : index
    %0 = vector.load %arg2[%c0, %c0_0] : memref<1x128xf32, #tpu.memory_space<vmem>>, vector<1x128xf32>
    %cst = arith.constant 7.812500e-03 : f32
    %1 = vector.broadcast %cst : f32 to vector<1x128xf32>
    %2 = arith.mulf %0, %1 : vector<1x128xf32>
    %c0_1 = arith.constant 0 : index
    %c0_2 = arith.constant 0 : index
    %3 = vector.load %arg3[%c0_1, %c0_2] : memref<1x128xf32, #tpu.memory_space<vmem>>, vector<1x128xf32>
    %cst_3 = arith.constant 7.812500e-03 : f32
    %4 = vector.broadcast %cst_3 : f32 to vector<1x128xf32>
    %5 = arith.mulf %3, %4 : vector<1x128xf32>
    %6 = arith.mulf %2, %2 : vector<1x128xf32>
    %7 = arith.subf %5, %6 : vector<1x128xf32>
    %cst_4 = arith.constant 0.000000e+00 : f32
    %8 = vector.broadcast %cst_4 : f32 to vector<1x128xf32>
    %9 = arith.maximumf %7, %8 : vector<1x128xf32>
    %10 = math.sqrt %9 : vector<1x128xf32>
    %cst_5 = arith.constant 9.99999974E-6 : f32
    %11 = vector.broadcast %cst_5 : f32 to vector<1x128xf32>
    %12 = arith.addf %10, %11 : vector<1x128xf32>
    %13 = tpu.reciprocal %12 {approx = true} : vector<1x128xf32> -> vector<1x128xf32>
    %c0_6 = arith.constant 0 : index
    %c0_7 = arith.constant 0 : index
    %14 = vector.load %arg4[%c0_6, %c0_7] : memref<1x128xf32, #tpu.memory_space<vmem>>, vector<1x128xf32>
    %15 = arith.mulf %14, %13 : vector<1x128xf32>
    %c0_8 = arith.constant 0 : index
    %c0_9 = arith.constant 0 : index
    %16 = vector.load %arg5[%c0_8, %c0_9] : memref<1x128xf32, #tpu.memory_space<vmem>>, vector<1x128xf32>
    %17 = arith.mulf %2, %15 : vector<1x128xf32>
    %18 = arith.subf %16, %17 : vector<1x128xf32>
    %c0_10 = arith.constant 0 : index
    %c0_11 = arith.constant 0 : index
    %19 = vector.load %arg1[%c0_10, %c0_11] : memref<128x128xf32, #tpu.memory_space<vmem>>, vector<128x128xf32>
    %20 = vector.broadcast %15 : vector<1x128xf32> to vector<128x128xf32>
    %21 = arith.mulf %19, %20 : vector<128x128xf32>
    %22 = vector.broadcast %18 : vector<1x128xf32> to vector<128x128xf32>
    %23 = arith.addf %21, %22 : vector<128x128xf32>
    %cst_12 = arith.constant 0.000000e+00 : f32
    %24 = vector.broadcast %cst_12 : f32 to vector<128x128xf32>
    %25 = arith.maximumf %23, %24 : vector<128x128xf32>
    %c0_13 = arith.constant 0 : index
    %c0_14 = arith.constant 0 : index
    %26 = vector.load %arg6[%c0_13, %c0_14] : memref<128x128xf32, #tpu.memory_space<vmem>>, vector<128x128xf32>
    tpu.vector_store %arg6[%c0_13, %c0_14], %25 {strides = array<i32>} : memref<128x128xf32, #tpu.memory_space<vmem>>, vector<128x128xf32>,
    return
  }
  func.func @transform_0(%arg0: i32) -> (i32, i32) {
    %c0_i32 = arith.constant 0 : i32
    %c0_i32_0 = arith.constant 0 : i32
    return %arg0, %c0_i32 : i32, i32
  }
  func.func @transform_1(%arg0: i32) -> (i32, i32) {
    %c0_i32 = arith.constant 0 : i32
    %c0_i32_0 = arith.constant 0 : i32
    %c0_i32_1 = arith.constant 0 : i32
    return %c0_i32, %c0_i32_0 : i32, i32
  }
  func.func @transform_2(%arg0: i32) -> (i32, i32) {
    %c0_i32 = arith.constant 0 : i32
    %c0_i32_0 = arith.constant 0 : i32
    %c0_i32_1 = arith.constant 0 : i32
    return %c0_i32, %c0_i32_0 : i32, i32
  }
  func.func @transform_3(%arg0: i32) -> (i32, i32) {
    %c0_i32 = arith.constant 0 : i32
    %c0_i32_0 = arith.constant 0 : i32
    %c0_i32_1 = arith.constant 0 : i32
    return %c0_i32, %c0_i32_0 : i32, i32
  }
  func.func @transform_4(%arg0: i32) -> (i32, i32) {
    %c0_i32 = arith.constant 0 : i32
    %c0_i32_0 = arith.constant 0 : i32
    %c0_i32_1 = arith.constant 0 : i32
    return %c0_i32, %c0_i32_0 : i32, i32
  }
  func.func @transform_5(%arg0: i32) -> (i32, i32) {
    %c0_i32 = arith.constant 0 : i32
    %c0_i32_0 = arith.constant 0 : i32
    return %arg0, %c0_i32 : i32, i32
  }
}

module attributes {stable_mosaic.version = 11 : i64} {
  func.func @kernel(%arg0: i32, %arg1: memref<128x128xf32, #tpu.memory_space<vmem>>, %arg2: memref<1x128xf32, #tpu.memory_space<vmem>>, %arg3: memref<1x128xf32, #tpu.memory_space<vmem>>, %arg4: memref<1x128xf32, #tpu.memory_space<vmem>>, %arg5: memref<1x128xf32, #tpu.memory_space<vmem>>, %arg6: memref<128x128xf32, #tpu.memory_space<vmem>>, %arg7: memref<128x128xf32, #tpu.memory_space<vmem>>) attributes {dimension_semantics = [#tpu.dimension_semantics<parallel>], iteration_bounds = array<i64: 1>, scalar_prefetch = 0 : i64, scratch_operands = 0 : i64, tpu.core_type = #tpu.core_type<tc>, window_params = [{transform_indices = @transform_0, window_bounds = array<i64: 128, 128>}, {pipeline_mode = #tpu.pipeline_mode<synchronous>, transform_indices = @transform_1, window_bounds = array<i64: 1, 128>}, {pipeline_mode = #tpu.pipeline_mode<synchronous>, transform_indices = @transform_2, window_bounds = array<i64: 1, 128>}, {pipeline_mode = #tpu.pipeline_mode<synchronous>, transform_indices = @transform_3, window_bounds = array<i64: 1, 128>}, {pipeline_mode = #tpu.pipeline_mode<synchronous>, transform_indices = @transform_4, window_bounds = array<i64: 1, 128>}, {transform_indices = @transform_5, window_bounds = array<i64: 128, 128>}, {transform_indices = @transform_6, window_bounds = array<i64: 128, 128>}]} {
    %c0 = arith.constant 0 : index
    %c0_0 = arith.constant 0 : index
    %0 = vector.load %arg2[%c0, %c0_0] : memref<1x128xf32, #tpu.memory_space<vmem>>, vector<1x128xf32>
    %cst = arith.constant 7.812500e-03 : f32
    %1 = vector.broadcast %cst : f32 to vector<1x128xf32>
    %2 = arith.mulf %0, %1 : vector<1x128xf32>
    %c0_1 = arith.constant 0 : index
    %c0_2 = arith.constant 0 : index
    %3 = vector.load %arg3[%c0_1, %c0_2] : memref<1x128xf32, #tpu.memory_space<vmem>>, vector<1x128xf32>
    %cst_3 = arith.constant 7.812500e-03 : f32
    %4 = vector.broadcast %cst_3 : f32 to vector<1x128xf32>
    %5 = arith.mulf %3, %4 : vector<1x128xf32>
    %6 = arith.mulf %2, %2 : vector<1x128xf32>
    %7 = arith.subf %5, %6 : vector<1x128xf32>
    %cst_4 = arith.constant 0.000000e+00 : f32
    %8 = vector.broadcast %cst_4 : f32 to vector<1x128xf32>
    %9 = arith.maximumf %7, %8 : vector<1x128xf32>
    %10 = math.sqrt %9 : vector<1x128xf32>
    %cst_5 = arith.constant 9.99999974E-6 : f32
    %11 = vector.broadcast %cst_5 : f32 to vector<1x128xf32>
    %12 = arith.addf %10, %11 : vector<1x128xf32>
    %13 = tpu.reciprocal %12 {approx = true} : vector<1x128xf32> -> vector<1x128xf32>
    %c0_6 = arith.constant 0 : index
    %c0_7 = arith.constant 0 : index
    %14 = vector.load %arg4[%c0_6, %c0_7] : memref<1x128xf32, #tpu.memory_space<vmem>>, vector<1x128xf32>
    %15 = arith.mulf %14, %13 : vector<1x128xf32>
    %c0_8 = arith.constant 0 : index
    %c0_9 = arith.constant 0 : index
    %16 = vector.load %arg5[%c0_8, %c0_9] : memref<1x128xf32, #tpu.memory_space<vmem>>, vector<1x128xf32>
    %17 = arith.mulf %2, %15 : vector<1x128xf32>
    %18 = arith.subf %16, %17 : vector<1x128xf32>
    %c0_10 = arith.constant 0 : index
    %c0_11 = arith.constant 0 : index
    %19 = vector.load %arg1[%c0_10, %c0_11] : memref<128x128xf32, #tpu.memory_space<vmem>>, vector<128x128xf32>
    %20 = vector.broadcast %15 : vector<1x128xf32> to vector<128x128xf32>
    %21 = arith.mulf %19, %20 : vector<128x128xf32>
    %22 = vector.broadcast %18 : vector<1x128xf32> to vector<128x128xf32>
    %23 = arith.addf %21, %22 : vector<128x128xf32>
    %c0_12 = arith.constant 0 : index
    %c0_13 = arith.constant 0 : index
    %24 = vector.load %arg6[%c0_12, %c0_13] : memref<128x128xf32, #tpu.memory_space<vmem>>, vector<128x128xf32>
    %25 = arith.addf %23, %24 : vector<128x128xf32>
    %cst_14 = arith.constant 0.000000e+00 : f32
    %26 = vector.broadcast %cst_14 : f32 to vector<128x128xf32>
    %27 = arith.maximumf %25, %26 : vector<128x128xf32>
    %c0_15 = arith.constant 0 : index
    %c0_16 = arith.constant 0 : index
    %28 = vector.load %arg7[%c0_15, %c0_16] : memref<128x128xf32, #tpu.memory_space<vmem>>, vector<128x128xf32>
    tpu.vector_store %arg7[%c0_15, %c0_16], %27 {strides = array<i32>} : memref<128x128xf32, #tpu.memory_space<vmem>>, vector<128x128xf32>,
    return
  }
  func.func @transform_0(%arg0: i32) -> (i32, i32) {
    %c0_i32 = arith.constant 0 : i32
    %c0_i32_0 = arith.constant 0 : i32
    return %arg0, %c0_i32 : i32, i32
  }
  func.func @transform_1(%arg0: i32) -> (i32, i32) {
    %c0_i32 = arith.constant 0 : i32
    %c0_i32_0 = arith.constant 0 : i32
    %c0_i32_1 = arith.constant 0 : i32
    return %c0_i32, %c0_i32_0 : i32, i32
  }
  func.func @transform_2(%arg0: i32) -> (i32, i32) {
    %c0_i32 = arith.constant 0 : i32
    %c0_i32_0 = arith.constant 0 : i32
    %c0_i32_1 = arith.constant 0 : i32
    return %c0_i32, %c0_i32_0 : i32, i32
  }
  func.func @transform_3(%arg0: i32) -> (i32, i32) {
    %c0_i32 = arith.constant 0 : i32
    %c0_i32_0 = arith.constant 0 : i32
    %c0_i32_1 = arith.constant 0 : i32
    return %c0_i32, %c0_i32_0 : i32, i32
  }
  func.func @transform_4(%arg0: i32) -> (i32, i32) {
    %c0_i32 = arith.constant 0 : i32
    %c0_i32_0 = arith.constant 0 : i32
    %c0_i32_1 = arith.constant 0 : i32
    return %c0_i32, %c0_i32_0 : i32, i32
  }
  func.func @transform_5(%arg0: i32) -> (i32, i32) {
    %c0_i32 = arith.constant 0 : i32
    %c0_i32_0 = arith.constant 0 : i32
    return %arg0, %c0_i32 : i32, i32
  }
  func.func @transform_6(%arg0: i32) -> (i32, i32) {
    %c0_i32 = arith.constant 0 : i32
    %c0_i32_0 = arith.constant 0 : i32
    return %arg0, %c0_i32 : i32, i32
  }
}

</mosaic_0001>

<bundles_post_ra>
// kernel: _lambda_.13
= control target key start
LH: loop header
LB: loop body
LE: loop exit
PB: predicated region body
PF: predicated region fallthrough
CT: control target
= control target key end

     0   :  { %v58_v13 = vlaneseq  ;;  %s263_s1 = inlined_call_operand.vmem [shape: f32[1,128], index: 1, kind: input, shape index: {}]   ;;  %s264_s2 = inlined_call_operand.vmem [shape: f32[1,128], index: 2, kind: input, shape index: {}]   ;;  %s265_s3 = inlined_call_operand.vmem [shape: f32[1,128], index: 3, kind: input, shape index: {}]   ;;  %s266_s0 = inlined_call_operand.vmem [shape: f32[128,128], index: 0, kind: input, shape index: {}]   ;;  %s267_s4 = inlined_call_operand.vmem [shape: f32[1,128], index: 4, kind: input, shape index: {}]   ;;  %s268_s5 = inlined_call_operand.vmem [shape: f32[128,128], index: 5, kind: output, shape index: {}]  }
   0x1   :  { %v20_v0 = vld [vmem:[%s263_s1] sm:$0x1]  ;;  %v42_v21 = vld [vmem:[%s266_s0 + $0x8] sm:$0xff]  ;;  %v43_v22 = vld [vmem:[%s266_s0 + $0x10] sm:$0xff] }
   0x2   :  { %v22_v1 = vld [vmem:[%s264_s2] sm:$0x1]  ;;  %v21_v2 = vmul.f32 0.0078125, %v20_v0  ;;  %v59_v14 = vshrl.u32 %v58_v13, 7  ;;  %v44_v23 = vld [vmem:[%s266_s0 + $0x18] sm:$0xff]  ;;  %v46_v27 = vld [vmem:[%s266_s0 + $0x28] sm:$0xff] }
   0x3   :  { %v23_v3 = vmul.f32 0.0078125, %v22_v1  ;;  %v36_v15 = vld [vmem:[%s265_s3] sm:$0x1]  ;;  %v47_v28 = vld [vmem:[%s266_s0 + $0x30] sm:$0xff]  ;;  %v48_v29 = vld [vmem:[%s266_s0 + $0x38] sm:$0xff] }
   0x4   :  { %v24_v4 = vmul.f32 %v21_v2, %v21_v2  ;;  %v60_v16 = vsub.s32 0, %v59_v14  ;;  %v38_v19 = vld [vmem:[%s267_s4] sm:$0x1]  ;;  %v50_v31 = vld [vmem:[%s266_s0 + $0x48] sm:$0xff]  ;;  %v51_v32 = vld [vmem:[%s266_s0 + $0x50] sm:$0xff] }
   0x5   :  { %v41_v20 = vld [vmem:[%s266_s0] sm:$0xff]  ;;  %v52_v37 = vld [vmem:[%s266_s0 + $0x58] sm:$0xff]  ;;  %v54_v39 = vld [vmem:[%s266_s0 + $0x68] sm:$0xff] }
   0x6   :  { %v25_v5 = vsub.f32 %v23_v3, %v24_v4  ;;  %v45_v24 = vld [vmem:[%s266_s0 + $0x20] sm:$0xff]  ;;  %v55_v56 = vld [vmem:[%s266_s0 + $0x70] sm:$0xff]  ;;  %v56_v57 = vld [vmem:[%s266_s0 + $0x78] sm:$0xff] }
   0x7   :  { %v49_v30 = vld [vmem:[%s266_s0 + $0x40] sm:$0xff] }
   0x8   :  { %v26_v6 = vmax.f32 %v25_v5, 0.0  ;;  %v53_v38 = vld [vmem:[%s266_s0 + $0x60] sm:$0xff] }
   0xa   :  { %121 = vrsqrt.f32 %v26_v6  ;;  %vm29_vm0 = vcmp.eq.f32.partialorder %v26_v6, inf  ;;  %v32_v8 = vand.u32 2147483648, %v26_v6  ;;  %vm31_vm1 = vcmp.eq.f32.partialorder %v26_v6, 0.0 }
  0x14   :  { %v122_v7 = vpop.eup %121 }
  0x15   :  { %v28_v9 = vmul.f32 %v122_v7, %v26_v6 }
  0x17   :  { %v30_v10 = vsel %vm29_vm0, %v26_v6, %v28_v9 }
  0x18   :  { %v33_v11 = vsel %vm31_vm1, %v32_v8, %v30_v10 }
  0x19   :  { %v34_v12 = vadd.f32 1e-05, %v33_v11 }
  0x1b   :  { %123 = vrcp.f32 %v34_v12 }
  0x25   :  { %v124_v17 = vpop.eup %123 }
  0x26   :  { %v37_v18 = vmul.f32 %v124_v17, %v36_v15 }
  0x28   :  { %v39_v25 = vmul.f32 %v37_v18, %v21_v2  ;;  %v61_v26 = vrot.slane %v37_v18, %v60_v16 }
  0x2a   :  { %v40_v33 = vsub.f32 %v38_v19, %v39_v25  ;;  %v63_v34 = vmul.f32 %v61_v26, %v41_v20  ;;  %v64_v35 = vmul.f32 %v61_v26, %v42_v21  ;;  %v65_v36 = vmul.f32 %v61_v26, %v43_v22 }
  0x2b   :  { %v66_v40 = vmul.f32 %v61_v26, %v44_v23  ;;  %v67_v41 = vmul.f32 %v61_v26, %v45_v24  ;;  %v68_v42 = vmul.f32 %v61_v26, %v46_v27  ;;  %v69_v43 = vmul.f32 %v61_v26, %v47_v28 }
  0x2c   :  { %v83_v44 = vrot.slane %v40_v33, %v60_v16  ;;  %v70_v45 = vmul.f32 %v61_v26, %v48_v29  ;;  %v71_v46 = vmul.f32 %v61_v26, %v49_v30  ;;  %v72_v47 = vmul.f32 %v61_v26, %v50_v31 }
  0x2d   :  { %v73_v48 = vmul.f32 %v61_v26, %v51_v32  ;;  %v74_v49 = vmul.f32 %v61_v26, %v52_v37  ;;  %v75_v50 = vmul.f32 %v61_v26, %v53_v38  ;;  %v76_v51 = vmul.f32 %v61_v26, %v54_v39 }
  0x2e   :  { %v85_v52 = vadd.f32 %v83_v44, %v63_v34  ;;  %v86_v53 = vadd.f32 %v83_v44, %v64_v35  ;;  %v87_v54 = vadd.f32 %v83_v44, %v65_v36  ;;  %v88_v55 = vadd.f32 %v83_v44, %v66_v40 }
  0x2f   :  { %v89_v58 = vadd.f32 %v83_v44, %v67_v41  ;;  %v90_v59 = vadd.f32 %v83_v44, %v68_v42  ;;  %v91_v60 = vadd.f32 %v83_v44, %v69_v43  ;;  %v92_v61 = vadd.f32 %v83_v44, %v70_v45 }
  0x30   :  { %101 = vst [vmem:[%s268_s5] sm:$0xff] %v85_v52  ;;  %102 = vst [vmem:[%s268_s5 + $0x8] sm:$0xff] %v86_v53  ;;  %v93_v62 = vadd.f32 %v83_v44, %v71_v46  ;;  %v94_v63 = vadd.f32 %v83_v44, %v72_v47  ;;  %v95_v0 = vadd.f32 %v83_v44, %v73_v48 }
  0x31   :  { %103 = vst [vmem:[%s268_s5 + $0x10] sm:$0xff] %v87_v54  ;;  %104 = vst [vmem:[%s268_s5 + $0x18] sm:$0xff] %v88_v55  ;;  %v96_v1 = vadd.f32 %v83_v44, %v74_v49  ;;  %v97_v2 = vadd.f32 %v83_v44, %v75_v50  ;;  %v98_v3 = vadd.f32 %v83_v44, %v76_v51 }
  0x32   :  { %105 = vst [vmem:[%s268_s5 + $0x20] sm:$0xff] %v89_v58  ;;  %106 = vst [vmem:[%s268_s5 + $0x28] sm:$0xff] %v90_v59  ;;  %v77_v4 = vmul.f32 %v61_v26, %v55_v56  ;;  %v78_v5 = vmul.f32 %v61_v26, %v56_v57 }
  0x33   :  { %107 = vst [vmem:[%s268_s5 + $0x30] sm:$0xff] %v91_v60  ;;  %108 = vst [vmem:[%s268_s5 + $0x38] sm:$0xff] %v92_v61 }
  0x34   :  { %109 = vst [vmem:[%s268_s5 + $0x40] sm:$0xff] %v93_v62  ;;  %110 = vst [vmem:[%s268_s5 + $0x48] sm:$0xff] %v94_v63  ;;  %v99_v6 = vadd.f32 %v83_v44, %v77_v4  ;;  %v100_v7 = vadd.f32 %v83_v44, %v78_v5 }
  0x35   :  { %111 = vst [vmem:[%s268_s5 + $0x50] sm:$0xff] %v95_v0  ;;  %112 = vst [vmem:[%s268_s5 + $0x58] sm:$0xff] %v96_v1 }
  0x36   :  { %113 = vst [vmem:[%s268_s5 + $0x60] sm:$0xff] %v97_v2  ;;  %114 = vst [vmem:[%s268_s5 + $0x68] sm:$0xff] %v98_v3 }
  0x37   :  { %115 = vst [vmem:[%s268_s5 + $0x70] sm:$0xff] %v99_v6  ;;  %116 = vst [vmem:[%s268_s5 + $0x78] sm:$0xff] %v100_v7 }

// kernel: _lambda_.12
= control target key start
LH: loop header
LB: loop body
LE: loop exit
PB: predicated region body
PF: predicated region fallthrough
CT: control target
= control target key end

     0   :  { %v435_v16 = vmov 0.0   ;;  %s575_s1 = inlined_call_operand.vmem [shape: bf16[128,128], index: 1, kind: input, shape index: {}]   ;;  %s576_s0 = inlined_call_operand.vmem [shape: bf16[128,128], index: 0, kind: input, shape index: {}]   ;;  %s577_s3 = inlined_call_operand.vmem [shape: f32[1,128], index: 3, kind: output, shape index: {1}]   ;;  %s578_s4 = inlined_call_operand.vmem [shape: f32[1,128], index: 4, kind: output, shape index: {2}]   ;;  %s579_s2 = inlined_call_operand.vmem [shape: f32[128,128], index: 2, kind: output, shape index: {0}]  }
   0x1   :  { %v419_v0 = vld [vmem:[%s575_s1] sm:$0xff]   ;;  %v420_v1 = vld [vmem:[%s575_s1 + $0x8] sm:$0xff]   ;;  %v421_v2 = vld [vmem:[%s575_s1 + $0x10] sm:$0xff]   ;;  %260 = vst [vmem:[%s577_s3] sm:$0x1] %v435_v16 }
   0x2   :  { %370 = vmatprep.subr.bf16.mxu0 %v419_v0  ;;  %402 = vmatprep.subr.bf16.mxu1 %v419_v0  ;;  %v422_v3 = vld [vmem:[%s575_s1 + $0x18] sm:$0xff]   ;;  %v427_v4 = vld [vmem:[%s576_s0] sm:$0xff]   ;;  %v424_v7 = vld [vmem:[%s575_s1 + $0x28] sm:$0xff]   ;;  %261 = vst [vmem:[%s578_s4] sm:$0x1] %v435_v16 }
   0x3   :  { %371 = vmatpush3.bf16.msra.mxu0 %v419_v0  ;;  %410 = vmatpush3.bf16.msra.mxu1 %v419_v0  ;;  %v423_v5 = vld [vmem:[%s575_s1 + $0x20] sm:$0xff]   ;;  %v425_v8 = vld [vmem:[%s575_s1 + $0x30] sm:$0xff]   ;;  %v426_v9 = vld [vmem:[%s575_s1 + $0x38] sm:$0xff]  }
   0x4   :  { %372 = vmatprep.subr.bf16.mxu0 %v420_v1  ;;  %403 = vmatprep.subr.bf16.mxu1 %v420_v1  ;;  %v431_v6 = vld [vmem:[%s576_s0 + $0x20] sm:$0xff]   ;;  %v428_v10 = vld [vmem:[%s576_s0 + $0x8] sm:$0xff]   ;;  %v429_v12 = vld [vmem:[%s576_s0 + $0x10] sm:$0xff]  }
   0x5   :  { %386 = vmatprep.mubr.bf16.mxu0 %v427_v4  ;;  %394 = vmatprep.mubr.bf16.mxu1 %v431_v6  ;;  %v432_v11 = vld [vmem:[%s576_s0 + $0x28] sm:$0xff]   ;;  %v433_v13 = vld [vmem:[%s576_s0 + $0x30] sm:$0xff]   ;;  %v430_v14 = vld [vmem:[%s576_s0 + $0x18] sm:$0xff]  }
   0x6   :  { %v434_v15 = vld [vmem:[%s576_s0 + $0x38] sm:$0xff]  }
   0x7   :  { %373 = vmatpush3.bf16.msra.mxu0 %v420_v1  ;;  %411 = vmatpush3.bf16.msra.mxu1 %v420_v1 }
   0x8   :  { %374 = vmatprep.subr.bf16.mxu0 %v421_v2  ;;  %404 = vmatprep.subr.bf16.mxu1 %v421_v2 }
   0xb   :  { %375 = vmatpush3.bf16.msra.mxu0 %v421_v2  ;;  %412 = vmatpush3.bf16.msra.mxu1 %v421_v2 }
   0xc   :  { %376 = vmatprep.subr.bf16.mxu0 %v422_v3  ;;  %405 = vmatprep.subr.bf16.mxu1 %v422_v3 }
   0xf   :  { %377 = vmatpush3.bf16.msra.mxu0 %v422_v3  ;;  %413 = vmatpush3.bf16.msra.mxu1 %v422_v3 }
  0x10   :  { %378 = vmatprep.subr.bf16.mxu0 %v423_v5  ;;  %406 = vmatprep.subr.bf16.mxu1 %v423_v5 }
  0x13   :  { %379 = vmatpush3.bf16.msra.mxu0 %v423_v5  ;;  %414 = vmatpush3.bf16.msra.mxu1 %v423_v5 }
  0x14   :  { %380 = vmatprep.subr.bf16.mxu0 %v424_v7  ;;  %407 = vmatprep.subr.bf16.mxu1 %v424_v7 }
  0x17   :  { %381 = vmatpush3.bf16.msra.mxu0 %v424_v7  ;;  %415 = vmatpush3.bf16.msra.mxu1 %v424_v7 }
  0x18   :  { %382 = vmatprep.subr.bf16.mxu0 %v425_v8  ;;  %408 = vmatprep.subr.bf16.mxu1 %v425_v8 }
  0x1b   :  { %383 = vmatpush3.bf16.msra.mxu0 %v425_v8  ;;  %416 = vmatpush3.bf16.msra.mxu1 %v425_v8 }
  0x1c   :  { %384 = vmatprep.subr.bf16.mxu0 %v426_v9  ;;  %409 = vmatprep.subr.bf16.mxu1 %v426_v9 }
  0x1f   :  { %385 = vmatpush3.bf16.msra.mxu0 %v426_v9  ;;  %417 = vmatpush3.bf16.msra.mxu1 %v426_v9 }
  0x22   :  { %387 = vmatmul.mubr.bf16.vlgmr.msra.gmra.mrb[0].mxu0 %v428_v10  ;;  %395 = vmatmul.mubr.bf16.vlgmr.msra.gmra.mrb[0].mxu1 %v432_v11 }
  0x23   :  { %390 = vmatprep.mubr.bf16.mxu0 %v429_v12  ;;  %398 = vmatprep.mubr.bf16.mxu1 %v433_v13 }
  0x2a   :  { %391 = vmatmul.mubr.bf16.gmra.mrb[4].mxu0 %v430_v14  ;;  %399 = vmatmul.mubr.bf16.gmra.mrb[4].mxu1 %v434_v15 }
  0xf5   :  { %v388_v17 = vpop.f32.mrb[0].mxu0  ;;  %v396_v18 = vpop.f32.mrb[0].mxu1 }
  0xf6   :  { %242 = vst [vmem:[%s579_s2 + $0x10] sm:$0xff] %v388_v17  ;;  %v177_v19 = vpop.f32.mrb[1].mxu0  ;;  %250 = vst [vmem:[%s579_s2 + $0x50] sm:$0xff] %v396_v18  ;;  %v209_v20 = vpop.f32.mrb[1].mxu1  ;;  %v289_v28 = vmul.f32 %v388_v17, %v388_v17  ;;  %v297_v60 = vmul.f32 %v396_v18, %v396_v18 }
  0xf7   :  { %240 = vst [vmem:[%s579_s2] sm:$0xff] %v177_v19  ;;  %v389_v21 = vpop.f32.mrb[2].mxu0  ;;  %248 = vst [vmem:[%s579_s2 + $0x40] sm:$0xff] %v209_v20  ;;  %v397_v22 = vpop.f32.mrb[2].mxu1  ;;  %v287_v25 = vmul.f32 %v177_v19, %v177_v19  ;;  %v295_v54 = vmul.f32 %v209_v20, %v209_v20 }
  0xf8   :  { %243 = vst [vmem:[%s579_s2 + $0x18] sm:$0xff] %v389_v21  ;;  %v180_v23 = vpop.f32.mrb[3].mxu0  ;;  %251 = vst [vmem:[%s579_s2 + $0x58] sm:$0xff] %v397_v22  ;;  %v212_v24 = vpop.f32.mrb[3].mxu1  ;;  %v290_v31 = vmul.f32 %v389_v21, %v389_v21  ;;  %v298_v63 = vmul.f32 %v397_v22, %v397_v22 }
  0xf9   :  { %241 = vst [vmem:[%s579_s2 + $0x8] sm:$0xff] %v180_v23  ;;  %v263_v26 = vadd.f32 %v180_v23, %v177_v19  ;;  %v288_v27 = vmul.f32 %v180_v23, %v180_v23  ;;  %249 = vst [vmem:[%s579_s2 + $0x48] sm:$0xff] %v212_v24  ;;  %v296_v59 = vmul.f32 %v212_v24, %v212_v24 }
  0xfb   :  { %v264_v29 = vadd.f32 %v388_v17, %v263_v26  ;;  %v303_v30 = vadd.f32 %v288_v27, %v287_v25  ;;  %v286_v27 = vld [vmem:[%s578_s4] sm:$0x1] }
  0xfd   :  { %v304_v32 = vadd.f32 %v303_v30, %v289_v28  ;;  %v392_v33 = vpop.f32.mrb[4].mxu0  ;;  %v265_v34 = vadd.f32 %v389_v21, %v264_v29  ;;  %v400_v35 = vpop.f32.mrb[4].mxu1 }
  0xfe   :  { %246 = vst [vmem:[%s579_s2 + $0x30] sm:$0xff] %v392_v33  ;;  %v193_v36 = vpop.f32.mrb[5].mxu0  ;;  %254 = vst [vmem:[%s579_s2 + $0x70] sm:$0xff] %v400_v35  ;;  %v225_v37 = vpop.f32.mrb[5].mxu1  ;;  %v293_v48 = vmul.f32 %v392_v33, %v392_v33  ;;  %v301_v8 = vmul.f32 %v400_v35, %v400_v35 }
  0xff   :  { %244 = vst [vmem:[%s579_s2 + $0x20] sm:$0xff] %v193_v36  ;;  %v266_v38 = vadd.f32 %v265_v34, %v193_v36  ;;  %v291_v39 = vmul.f32 %v193_v36, %v193_v36  ;;  %v305_v40 = vadd.f32 %v304_v32, %v290_v31  ;;  %v393_v41 = vpop.f32.mrb[6].mxu0  ;;  %252 = vst [vmem:[%s579_s2 + $0x60] sm:$0xff] %v225_v37  ;;  %v401_v42 = vpop.f32.mrb[6].mxu1 }
 0x100   :  { %247 = vst [vmem:[%s579_s2 + $0x38] sm:$0xff] %v393_v41  ;;  %v196_v43 = vpop.f32.mrb[7].mxu0  ;;  %255 = vst [vmem:[%s579_s2 + $0x78] sm:$0xff] %v401_v42  ;;  %v228_v44 = vpop.f32.mrb[7].mxu1  ;;  %v294_v51 = vmul.f32 %v393_v41, %v393_v41  ;;  %v299_v2 = vmul.f32 %v225_v37, %v225_v37  ;;  %v302_v11 = vmul.f32 %v401_v42, %v401_v42 }
 0x101   :  { %v306_v45 = vadd.f32 %v305_v40, %v291_v39  ;;  %245 = vst [vmem:[%s579_s2 + $0x28] sm:$0xff] %v196_v43  ;;  %v267_v46 = vadd.f32 %v266_v38, %v196_v43  ;;  %v292_v47 = vmul.f32 %v196_v43, %v196_v43  ;;  %253 = vst [vmem:[%s579_s2 + $0x68] sm:$0xff] %v228_v44 }
 0x102   :  { %v300_v7 = vmul.f32 %v228_v44, %v228_v44 }
 0x103   :  { %v268_v49 = vadd.f32 %v392_v33, %v267_v46  ;;  %v307_v50 = vadd.f32 %v306_v45, %v292_v47 }
 0x105   :  { %v308_v52 = vadd.f32 %v307_v50, %v293_v48  ;;  %v269_v53 = vadd.f32 %v393_v41, %v268_v49 }
 0x107   :  { %v270_v55 = vadd.f32 %v269_v53, %v209_v20  ;;  %v309_v56 = vadd.f32 %v308_v52, %v294_v51 }
 0x109   :  { %v310_v57 = vadd.f32 %v309_v56, %v295_v54  ;;  %v271_v58 = vadd.f32 %v270_v55, %v212_v24  ;;  %v262_v24 = vld [vmem:[%s577_s3] sm:$0x1] }
 0x10b   :  { %v272_v61 = vadd.f32 %v396_v18, %v271_v58  ;;  %v311_v62 = vadd.f32 %v310_v57, %v296_v59 }
 0x10d   :  { %v312_v0 = vadd.f32 %v311_v62, %v297_v60  ;;  %v273_v1 = vadd.f32 %v397_v22, %v272_v61 }
 0x10f   :  { %v274_v3 = vadd.f32 %v273_v1, %v225_v37  ;;  %v313_v4 = vadd.f32 %v312_v0, %v298_v63 }
 0x111   :  { %v314_v5 = vadd.f32 %v313_v4, %v299_v2  ;;  %v275_v6 = vadd.f32 %v274_v3, %v228_v44 }
 0x113   :  { %v276_v9 = vadd.f32 %v400_v35, %v275_v6  ;;  %v315_v10 = vadd.f32 %v314_v5, %v300_v7 }
 0x115   :  { %v277_v12 = vadd.f32 %v401_v42, %v276_v9  ;;  %v316_v13 = vadd.f32 %v315_v10, %v301_v8 }
 0x117   :  { %v278_v14 = vrot.slane %v277_v12, 4  ;;  %v317_v15 = vadd.f32 %v316_v13, %v302_v11 }
 0x119   :  { %v279_v16 = vadd.f32 %v278_v14, %v277_v12  ;;  %v318_v17 = vrot.slane %v317_v15, 4 }
 0x11b   :  { %v280_v18 = vrot.slane %v279_v16, 2  ;;  %v319_v19 = vadd.f32 %v318_v17, %v317_v15 }
 0x11d   :  { %v281_v20 = vadd.f32 %v280_v18, %v279_v16  ;;  %v320_v21 = vrot.slane %v319_v19, 2 }
 0x11f   :  { %v282_v22 = vrot.slane %v281_v20, 1  ;;  %v321_v23 = vadd.f32 %v320_v21, %v319_v19 }
 0x121   :  { %v283_v25 = vadd.f32 %v282_v22, %v281_v20  ;;  %v322_v26 = vrot.slane %v321_v23, 1 }
 0x123   :  { %v284_v28 = vadd.f32 %v283_v25, %v262_v24  ;;  %v323_v29 = vadd.f32 %v322_v26, %v321_v23 }
 0x125   :  { %285 = vst [vmem:[%s577_s3] sm:$0x1] %v284_v28  ;;  %v324_v30 = vadd.f32 %v323_v29, %v286_v27 }
 0x127   :  { %325 = vst [vmem:[%s578_s4] sm:$0x1] %v324_v30 }

// kernel: _lambda_.11
= control target key start
LH: loop header
LB: loop body
LE: loop exit
PB: predicated region body
PF: predicated region fallthrough
CT: control target
= control target key end

     0   :  { %v58_v13 = vlaneseq  ;;  %s279_s1 = inlined_call_operand.vmem [shape: f32[1,128], index: 1, kind: input, shape index: {}]   ;;  %s280_s2 = inlined_call_operand.vmem [shape: f32[1,128], index: 2, kind: input, shape index: {}]   ;;  %s281_s3 = inlined_call_operand.vmem [shape: f32[1,128], index: 3, kind: input, shape index: {}]   ;;  %s282_s0 = inlined_call_operand.vmem [shape: f32[128,128], index: 0, kind: input, shape index: {}]   ;;  %s283_s4 = inlined_call_operand.vmem [shape: f32[1,128], index: 4, kind: input, shape index: {}]   ;;  %s284_s5 = inlined_call_operand.vmem [shape: f32[128,128], index: 5, kind: output, shape index: {}]  }
   0x1   :  { %v20_v0 = vld [vmem:[%s279_s1] sm:$0x1]  ;;  %v42_v21 = vld [vmem:[%s282_s0 + $0x8] sm:$0xff]  ;;  %v43_v22 = vld [vmem:[%s282_s0 + $0x10] sm:$0xff] }
   0x2   :  { %v22_v1 = vld [vmem:[%s280_s2] sm:$0x1]  ;;  %v21_v2 = vmul.f32 0.0078125, %v20_v0  ;;  %v59_v14 = vshrl.u32 %v58_v13, 7  ;;  %v44_v23 = vld [vmem:[%s282_s0 + $0x18] sm:$0xff]  ;;  %v46_v27 = vld [vmem:[%s282_s0 + $0x28] sm:$0xff] }
   0x3   :  { %v23_v3 = vmul.f32 0.0078125, %v22_v1  ;;  %v36_v15 = vld [vmem:[%s281_s3] sm:$0x1]  ;;  %v47_v28 = vld [vmem:[%s282_s0 + $0x30] sm:$0xff]  ;;  %v48_v29 = vld [vmem:[%s282_s0 + $0x38] sm:$0xff] }
   0x4   :  { %v24_v4 = vmul.f32 %v21_v2, %v21_v2  ;;  %v60_v16 = vsub.s32 0, %v59_v14  ;;  %v38_v19 = vld [vmem:[%s283_s4] sm:$0x1]  ;;  %v50_v31 = vld [vmem:[%s282_s0 + $0x48] sm:$0xff]  ;;  %v51_v32 = vld [vmem:[%s282_s0 + $0x50] sm:$0xff] }
   0x5   :  { %v41_v20 = vld [vmem:[%s282_s0] sm:$0xff]  ;;  %v52_v37 = vld [vmem:[%s282_s0 + $0x58] sm:$0xff]  ;;  %v54_v39 = vld [vmem:[%s282_s0 + $0x68] sm:$0xff] }
   0x6   :  { %v25_v5 = vsub.f32 %v23_v3, %v24_v4  ;;  %v45_v24 = vld [vmem:[%s282_s0 + $0x20] sm:$0xff]  ;;  %v55_v0 = vld [vmem:[%s282_s0 + $0x70] sm:$0xff]  ;;  %v56_v1 = vld [vmem:[%s282_s0 + $0x78] sm:$0xff] }
   0x7   :  { %v49_v30 = vld [vmem:[%s282_s0 + $0x40] sm:$0xff] }
   0x8   :  { %v26_v6 = vmax.f32 %v25_v5, 0.0  ;;  %v53_v38 = vld [vmem:[%s282_s0 + $0x60] sm:$0xff] }
   0xa   :  { %137 = vrsqrt.f32 %v26_v6  ;;  %vm29_vm0 = vcmp.eq.f32.partialorder %v26_v6, inf  ;;  %v32_v8 = vand.u32 2147483648, %v26_v6  ;;  %vm31_vm1 = vcmp.eq.f32.partialorder %v26_v6, 0.0 }
  0x14   :  { %v138_v7 = vpop.eup %137 }
  0x15   :  { %v28_v9 = vmul.f32 %v138_v7, %v26_v6 }
  0x17   :  { %v30_v10 = vsel %vm29_vm0, %v26_v6, %v28_v9 }
  0x18   :  { %v33_v11 = vsel %vm31_vm1, %v32_v8, %v30_v10 }
  0x19   :  { %v34_v12 = vadd.f32 1e-05, %v33_v11 }
  0x1b   :  { %139 = vrcp.f32 %v34_v12 }
  0x25   :  { %v140_v17 = vpop.eup %139 }
  0x26   :  { %v37_v18 = vmul.f32 %v140_v17, %v36_v15 }
  0x28   :  { %v39_v25 = vmul.f32 %v37_v18, %v21_v2  ;;  %v61_v26 = vrot.slane %v37_v18, %v60_v16 }
  0x2a   :  { %v40_v33 = vsub.f32 %v38_v19, %v39_v25  ;;  %v63_v34 = vmul.f32 %v61_v26, %v41_v20  ;;  %v64_v35 = vmul.f32 %v61_v26, %v42_v21  ;;  %v65_v36 = vmul.f32 %v61_v26, %v43_v22 }
  0x2b   :  { %v66_v40 = vmul.f32 %v61_v26, %v44_v23  ;;  %v67_v41 = vmul.f32 %v61_v26, %v45_v24  ;;  %v68_v42 = vmul.f32 %v61_v26, %v46_v27  ;;  %v69_v43 = vmul.f32 %v61_v26, %v47_v28 }
  0x2c   :  { %v83_v44 = vrot.slane %v40_v33, %v60_v16  ;;  %v70_v45 = vmul.f32 %v61_v26, %v48_v29  ;;  %v71_v46 = vmul.f32 %v61_v26, %v49_v30  ;;  %v72_v47 = vmul.f32 %v61_v26, %v50_v31 }
  0x2d   :  { %v73_v48 = vmul.f32 %v61_v26, %v51_v32  ;;  %v74_v49 = vmul.f32 %v61_v26, %v52_v37  ;;  %v75_v50 = vmul.f32 %v61_v26, %v53_v38  ;;  %v76_v51 = vmul.f32 %v61_v26, %v54_v39 }
  0x2e   :  { %v85_v52 = vadd.f32 %v83_v44, %v63_v34  ;;  %v86_v53 = vadd.f32 %v83_v44, %v64_v35  ;;  %v87_v54 = vadd.f32 %v83_v44, %v65_v36  ;;  %v88_v55 = vadd.f32 %v83_v44, %v66_v40 }
  0x2f   :  { %v89_v56 = vadd.f32 %v83_v44, %v67_v41  ;;  %v90_v57 = vadd.f32 %v83_v44, %v68_v42  ;;  %v91_v58 = vadd.f32 %v83_v44, %v69_v43  ;;  %v92_v59 = vadd.f32 %v83_v44, %v70_v45 }
  0x30   :  { %v101_v60 = vmax.f32 %v85_v52, 0.0  ;;  %v102_v61 = vmax.f32 %v86_v53, 0.0  ;;  %v103_v62 = vmax.f32 %v87_v54, 0.0  ;;  %v104_v63 = vmax.f32 %v88_v55, 0.0 }
  0x31   :  { %v105_v2 = vmax.f32 %v89_v56, 0.0  ;;  %v106_v3 = vmax.f32 %v90_v57, 0.0  ;;  %v107_v4 = vmax.f32 %v91_v58, 0.0  ;;  %v108_v5 = vmax.f32 %v92_v59, 0.0 }
  0x32   :  { %117 = vst [vmem:[%s284_s5] sm:$0xff] %v101_v60  ;;  %118 = vst [vmem:[%s284_s5 + $0x8] sm:$0xff] %v102_v61  ;;  %v93_v6 = vadd.f32 %v83_v44, %v71_v46  ;;  %v94_v7 = vadd.f32 %v83_v44, %v72_v47  ;;  %v95_v8 = vadd.f32 %v83_v44, %v73_v48 }
  0x33   :  { %119 = vst [vmem:[%s284_s5 + $0x10] sm:$0xff] %v103_v62  ;;  %120 = vst [vmem:[%s284_s5 + $0x18] sm:$0xff] %v104_v63  ;;  %v96_v9 = vadd.f32 %v83_v44, %v74_v49  ;;  %v97_v10 = vadd.f32 %v83_v44, %v75_v50  ;;  %v98_v11 = vadd.f32 %v83_v44, %v76_v51 }
  0x34   :  { %121 = vst [vmem:[%s284_s5 + $0x20] sm:$0xff] %v105_v2  ;;  %122 = vst [vmem:[%s284_s5 + $0x28] sm:$0xff] %v106_v3  ;;  %v77_v12 = vmul.f32 %v61_v26, %v55_v0  ;;  %v78_v13 = vmul.f32 %v61_v26, %v56_v1  ;;  %v109_v14 = vmax.f32 %v93_v6, 0.0  ;;  %v110_v15 = vmax.f32 %v94_v7, 0.0 }
  0x35   :  { %123 = vst [vmem:[%s284_s5 + $0x30] sm:$0xff] %v107_v4  ;;  %124 = vst [vmem:[%s284_s5 + $0x38] sm:$0xff] %v108_v5  ;;  %v111_v16 = vmax.f32 %v95_v8, 0.0  ;;  %v112_v17 = vmax.f32 %v96_v9, 0.0  ;;  %v113_v18 = vmax.f32 %v97_v10, 0.0  ;;  %v114_v19 = vmax.f32 %v98_v11, 0.0 }
  0x36   :  { %v99_v20 = vadd.f32 %v83_v44, %v77_v12  ;;  %v100_v21 = vadd.f32 %v83_v44, %v78_v13  ;;  %125 = vst [vmem:[%s284_s5 + $0x40] sm:$0xff] %v109_v14  ;;  %126 = vst [vmem:[%s284_s5 + $0x48] sm:$0xff] %v110_v15 }
  0x37   :  { %127 = vst [vmem:[%s284_s5 + $0x50] sm:$0xff] %v111_v16  ;;  %128 = vst [vmem:[%s284_s5 + $0x58] sm:$0xff] %v112_v17 }
  0x38   :  { %129 = vst [vmem:[%s284_s5 + $0x60] sm:$0xff] %v113_v18  ;;  %130 = vst [vmem:[%s284_s5 + $0x68] sm:$0xff] %v114_v19  ;;  %v115_v22 = vmax.f32 %v99_v20, 0.0  ;;  %v116_v23 = vmax.f32 %v100_v21, 0.0 }
  0x3a   :  { %131 = vst [vmem:[%s284_s5 + $0x70] sm:$0xff] %v115_v22  ;;  %132 = vst [vmem:[%s284_s5 + $0x78] sm:$0xff] %v116_v23 }

// kernel: _lambda_.15
= control target key start
LH: loop header
LB: loop body
LE: loop exit
PB: predicated region body
PF: predicated region fallthrough
CT: control target
= control target key end

     0   :  { %v61_v13 = vlaneseq  ;;  %s403_s1 = inlined_call_operand.vmem [shape: f32[1,128], index: 1, kind: input, shape index: {}]   ;;  %s404_s2 = inlined_call_operand.vmem [shape: f32[1,128], index: 2, kind: input, shape index: {}]   ;;  %s405_s3 = inlined_call_operand.vmem [shape: f32[1,128], index: 3, kind: input, shape index: {}]   ;;  %s406_s0 = inlined_call_operand.vmem [shape: f32[128,128], index: 0, kind: input, shape index: {}]   ;;  %s407_s4 = inlined_call_operand.vmem [shape: f32[1,128], index: 4, kind: input, shape index: {}]   ;;  %s408_s5 = inlined_call_operand.vmem [shape: f32[128,128], index: 5, kind: input, shape index: {}]   ;;  %s409_s6 = inlined_call_operand.vmem [shape: f32[128,128], index: 6, kind: output, shape index: {}]  }
   0x1   :  { %v23_v0 = vld [vmem:[%s403_s1] sm:$0x1]  ;;  %v45_v21 = vld [vmem:[%s406_s0 + $0x8] sm:$0xff]  ;;  %v46_v22 = vld [vmem:[%s406_s0 + $0x10] sm:$0xff] }
   0x2   :  { %v25_v1 = vld [vmem:[%s404_s2] sm:$0x1]  ;;  %v24_v2 = vmul.f32 0.0078125, %v23_v0  ;;  %v62_v14 = vshrl.u32 %v61_v13, 7  ;;  %v47_v23 = vld [vmem:[%s406_s0 + $0x18] sm:$0xff]  ;;  %v49_v27 = vld [vmem:[%s406_s0 + $0x28] sm:$0xff] }
   0x3   :  { %v26_v3 = vmul.f32 0.0078125, %v25_v1  ;;  %v39_v15 = vld [vmem:[%s405_s3] sm:$0x1]  ;;  %v50_v28 = vld [vmem:[%s406_s0 + $0x30] sm:$0xff]  ;;  %v51_v29 = vld [vmem:[%s406_s0 + $0x38] sm:$0xff] }
   0x4   :  { %v27_v4 = vmul.f32 %v24_v2, %v24_v2  ;;  %v63_v16 = vsub.s32 0, %v62_v14  ;;  %v41_v19 = vld [vmem:[%s407_s4] sm:$0x1]  ;;  %v53_v31 = vld [vmem:[%s406_s0 + $0x48] sm:$0xff]  ;;  %v54_v32 = vld [vmem:[%s406_s0 + $0x50] sm:$0xff] }
   0x5   :  { %v44_v20 = vld [vmem:[%s406_s0] sm:$0xff]  ;;  %v55_v37 = vld [vmem:[%s406_s0 + $0x58] sm:$0xff]  ;;  %v57_v39 = vld [vmem:[%s406_s0 + $0x68] sm:$0xff] }
   0x6   :  { %v28_v5 = vsub.f32 %v26_v3, %v27_v4  ;;  %v48_v24 = vld [vmem:[%s406_s0 + $0x20] sm:$0xff]  ;;  %v105_v46 = vld [vmem:[%s408_s5 + $0x8] sm:$0xff]  ;;  %v106_v50 = vld [vmem:[%s408_s5 + $0x10] sm:$0xff] }
   0x7   :  { %v52_v30 = vld [vmem:[%s406_s0 + $0x40] sm:$0xff]  ;;  %v107_v51 = vld [vmem:[%s408_s5 + $0x18] sm:$0xff]  ;;  %v109_v61 = vld [vmem:[%s408_s5 + $0x28] sm:$0xff] }
   0x8   :  { %v29_v6 = vmax.f32 %v28_v5, 0.0  ;;  %v56_v38 = vld [vmem:[%s406_s0 + $0x60] sm:$0xff]  ;;  %v110_v62 = vld [vmem:[%s408_s5 + $0x30] sm:$0xff]  ;;  %v111_v63 = vld [vmem:[%s408_s5 + $0x38] sm:$0xff] }
   0x9   :  { %v104_v45 = vld [vmem:[%s408_s5] sm:$0xff]  ;;  %v113_v13 = vld [vmem:[%s408_s5 + $0x48] sm:$0xff] }
   0xa   :  { %172 = vrsqrt.f32 %v29_v6  ;;  %vm32_vm0 = vcmp.eq.f32.partialorder %v29_v6, inf  ;;  %v35_v8 = vand.u32 2147483648, %v29_v6  ;;  %vm34_vm1 = vcmp.eq.f32.partialorder %v29_v6, 0.0  ;;  %v108_v52 = vld [vmem:[%s408_s5 + $0x20] sm:$0xff] }
  0x14   :  { %v173_v7 = vpop.eup %172 }
  0x15   :  { %v31_v9 = vmul.f32 %v173_v7, %v29_v6 }
  0x17   :  { %v33_v10 = vsel %vm32_vm0, %v29_v6, %v31_v9 }
  0x18   :  { %v36_v11 = vsel %vm34_vm1, %v35_v8, %v33_v10 }
  0x19   :  { %v37_v12 = vadd.f32 1e-05, %v36_v11 }
  0x1b   :  { %174 = vrcp.f32 %v37_v12  ;;  %v112_v12 = vld [vmem:[%s408_s5 + $0x40] sm:$0xff] }
  0x25   :  { %v175_v17 = vpop.eup %174 }
  0x26   :  { %v40_v18 = vmul.f32 %v175_v17, %v39_v15 }
  0x28   :  { %v42_v25 = vmul.f32 %v40_v18, %v24_v2  ;;  %v238_v26 = vrot.slane %v40_v18, %v63_v16  ;;  %v58_v18 = vld [vmem:[%s406_s0 + $0x70] sm:$0xff] }
  0x2a   :  { %v43_v33 = vsub.f32 %v41_v19, %v42_v25  ;;  %v66_v34 = vmul.f32 %v238_v26, %v44_v20  ;;  %v67_v35 = vmul.f32 %v238_v26, %v45_v21  ;;  %v68_v36 = vmul.f32 %v238_v26, %v46_v22  ;;  %v59_v19 = vld [vmem:[%s406_s0 + $0x78] sm:$0xff] }
  0x2b   :  { %v69_v40 = vmul.f32 %v238_v26, %v47_v23  ;;  %v70_v41 = vmul.f32 %v238_v26, %v48_v24  ;;  %v71_v42 = vmul.f32 %v238_v26, %v49_v27  ;;  %v72_v43 = vmul.f32 %v238_v26, %v50_v28  ;;  %v114_v24 = vld [vmem:[%s408_s5 + $0x50] sm:$0xff]  ;;  %v115_v25 = vld [vmem:[%s408_s5 + $0x58] sm:$0xff] }
  0x2c   :  { %v274_v44 = vrot.slane %v43_v33, %v63_v16  ;;  %v73_v47 = vmul.f32 %v238_v26, %v51_v29  ;;  %v74_v48 = vmul.f32 %v238_v26, %v52_v30  ;;  %v75_v49 = vmul.f32 %v238_v26, %v53_v31  ;;  %v116_v31 = vld [vmem:[%s408_s5 + $0x60] sm:$0xff] }
  0x2d   :  { %v76_v53 = vmul.f32 %v238_v26, %v54_v32  ;;  %v77_v54 = vmul.f32 %v238_v26, %v55_v37  ;;  %v78_v55 = vmul.f32 %v238_v26, %v56_v38  ;;  %v79_v56 = vmul.f32 %v238_v26, %v57_v39  ;;  %v117_v32 = vld [vmem:[%s408_s5 + $0x68] sm:$0xff] }
  0x2e   :  { %v88_v57 = vadd.f32 %v274_v44, %v66_v34  ;;  %v89_v58 = vadd.f32 %v274_v44, %v67_v35  ;;  %v90_v59 = vadd.f32 %v274_v44, %v68_v36  ;;  %v91_v60 = vadd.f32 %v274_v44, %v69_v40 }
  0x2f   :  { %v92_v0 = vadd.f32 %v274_v44, %v70_v41  ;;  %v93_v1 = vadd.f32 %v274_v44, %v71_v42  ;;  %v94_v2 = vadd.f32 %v274_v44, %v72_v43  ;;  %v95_v3 = vadd.f32 %v274_v44, %v73_v47  ;;  %v118_v41 = vld [vmem:[%s408_s5 + $0x70] sm:$0xff]  ;;  %v119_v42 = vld [vmem:[%s408_s5 + $0x78] sm:$0xff] }
  0x30   :  { %v120_v4 = vadd.f32 %v104_v45, %v88_v57  ;;  %v121_v5 = vadd.f32 %v105_v46, %v89_v58  ;;  %v122_v6 = vadd.f32 %v106_v50, %v90_v59  ;;  %v123_v7 = vadd.f32 %v107_v51, %v91_v60 }
  0x31   :  { %v124_v8 = vadd.f32 %v108_v52, %v92_v0  ;;  %v125_v9 = vadd.f32 %v109_v61, %v93_v1  ;;  %v126_v10 = vadd.f32 %v110_v62, %v94_v2  ;;  %v127_v11 = vadd.f32 %v111_v63, %v95_v3 }
  0x32   :  { %v136_v14 = vmax.f32 %v120_v4, 0.0  ;;  %v137_v15 = vmax.f32 %v121_v5, 0.0  ;;  %v138_v16 = vmax.f32 %v122_v6, 0.0  ;;  %v139_v17 = vmax.f32 %v123_v7, 0.0 }
  0x33   :  { %v140_v20 = vmax.f32 %v124_v8, 0.0  ;;  %v141_v21 = vmax.f32 %v125_v9, 0.0  ;;  %v142_v22 = vmax.f32 %v126_v10, 0.0  ;;  %v143_v23 = vmax.f32 %v127_v11, 0.0 }
  0x34   :  { %152 = vst [vmem:[%s409_s6] sm:$0xff] %v136_v14  ;;  %153 = vst [vmem:[%s409_s6 + $0x8] sm:$0xff] %v137_v15  ;;  %v96_v27 = vadd.f32 %v274_v44, %v74_v48  ;;  %v97_v28 = vadd.f32 %v274_v44, %v75_v49  ;;  %v98_v29 = vadd.f32 %v274_v44, %v76_v53 }
  0x35   :  { %154 = vst [vmem:[%s409_s6 + $0x10] sm:$0xff] %v138_v16  ;;  %155 = vst [vmem:[%s409_s6 + $0x18] sm:$0xff] %v139_v17  ;;  %v99_v30 = vadd.f32 %v274_v44, %v77_v54  ;;  %v100_v33 = vadd.f32 %v274_v44, %v78_v55  ;;  %v101_v34 = vadd.f32 %v274_v44, %v79_v56 }
  0x36   :  { %156 = vst [vmem:[%s409_s6 + $0x20] sm:$0xff] %v140_v20  ;;  %157 = vst [vmem:[%s409_s6 + $0x28] sm:$0xff] %v141_v21  ;;  %v80_v35 = vmul.f32 %v238_v26, %v58_v18  ;;  %v81_v36 = vmul.f32 %v238_v26, %v59_v19  ;;  %v128_v37 = vadd.f32 %v112_v12, %v96_v27 }
  0x37   :  { %158 = vst [vmem:[%s409_s6 + $0x30] sm:$0xff] %v142_v22  ;;  %159 = vst [vmem:[%s409_s6 + $0x38] sm:$0xff] %v143_v23  ;;  %v129_v38 = vadd.f32 %v113_v13, %v97_v28  ;;  %v130_v39 = vadd.f32 %v114_v24, %v98_v29  ;;  %v131_v40 = vadd.f32 %v115_v25, %v99_v30 }
  0x38   :  { %v132_v43 = vadd.f32 %v116_v31, %v100_v33  ;;  %v133_v45 = vadd.f32 %v117_v32, %v101_v34  ;;  %v102_v46 = vadd.f32 %v274_v44, %v80_v35  ;;  %v103_v47 = vadd.f32 %v274_v44, %v81_v36 }
  0x39   :  { %v144_v48 = vmax.f32 %v128_v37, 0.0  ;;  %v145_v26 = vmax.f32 %v129_v38, 0.0  ;;  %v146_v49 = vmax.f32 %v130_v39, 0.0  ;;  %v147_v50 = vmax.f32 %v131_v40, 0.0 }
  0x3a   :  { %v148_v51 = vmax.f32 %v132_v43, 0.0  ;;  %v149_v52 = vmax.f32 %v133_v45, 0.0  ;;  %v134_v53 = vadd.f32 %v118_v41, %v102_v46  ;;  %v135_v54 = vadd.f32 %v119_v42, %v103_v47 }
  0x3b   :  { %160 = vst [vmem:[%s409_s6 + $0x40] sm:$0xff] %v144_v48  ;;  %161 = vst [vmem:[%s409_s6 + $0x48] sm:$0xff] %v145_v26 }
  0x3c   :  { %162 = vst [vmem:[%s409_s6 + $0x50] sm:$0xff] %v146_v49  ;;  %163 = vst [vmem:[%s409_s6 + $0x58] sm:$0xff] %v147_v50  ;;  %v150_v44 = vmax.f32 %v134_v53, 0.0  ;;  %v151_v55 = vmax.f32 %v135_v54, 0.0 }
  0x3d   :  { %164 = vst [vmem:[%s409_s6 + $0x60] sm:$0xff] %v148_v51  ;;  %165 = vst [vmem:[%s409_s6 + $0x68] sm:$0xff] %v149_v52 }
  0x3e   :  { %166 = vst [vmem:[%s409_s6 + $0x70] sm:$0xff] %v150_v44  ;;  %167 = vst [vmem:[%s409_s6 + $0x78] sm:$0xff] %v151_v55 }

</bundles_post_ra>
